<compile_context>
chip_gen: v7x
topology: tpu7x:2x2x1
jax: 0.10.0
libtpu: 0.0.40
codegen_flags: <defaults>
</compile_context>

<pallas_src>
import functools

import jax
import jax.numpy as jnp
from jax.experimental import pallas as pl
from jax.experimental.pallas import tpu as pltpu


_NEG_LARGE = -1e30  # stands in for -inf on masked-out vocab rows (safe in exp)


def _unigram_kernel(s_ref, x_ref, o_ref, rowsum_acc, *, V, N, TV, TN):
    """Per grid step (vi, ni):
         s_ref      : (TV, 1)  logits tile (constant across ni)
         x_ref      : (TV, TN) counts tile, native dtype, native (V, N) layout
         o_ref      : (1, 128) per-V-tile partial stats (leading dim squeezed)
                        lane 0: dot(rowsum, s)   lane 1: sum(counts)
                        lane 2: max(s)           lane 3: sum(exp(s - max))
         rowsum_acc : (TV, 1) f32 scratch, accumulated over ni
    """
    vi = pl.program_id(0)
    ni = pl.program_id(1)
    n_last = pl.num_programs(1) - 1

    # Upcast in-kernel (free relative to the HBM read; required on v5e which
    # has no bf16 VPU arithmetic).
    x = x_ref[...].astype(jnp.float32)                  # (TV, TN)

    @pl.when(ni == 0)
    def _init():
        rowsum_acc[...] = jnp.zeros_like(rowsum_acc)

    if N % TN != 0:
        # Boundary-only column masking: interior N tiles are mask-free; only
        # the last N tile pays for a (1, TN) lane mask + select.
        @pl.when(ni != n_last)
        def _acc_plain():
            rowsum_acc[...] += jnp.sum(x, axis=1, keepdims=True)

        @pl.when(ni == n_last)
        def _acc_masked():
            cols = jax.lax.broadcasted_iota(jnp.int32, (1, TN), 1) + ni * TN
            xm = jnp.where(cols < N, x, 0.0)
            rowsum_acc[...] += jnp.sum(xm, axis=1, keepdims=True)
    else:
        rowsum_acc[...] += jnp.sum(x, axis=1, keepdims=True)

    @pl.when(ni == n_last)
    def _finalize():
        s = s_ref[...]                                   # (TV, 1) f32
        r = rowsum_acc[...]                              # (TV, 1) f32
        if V % TV != 0:
            # Boundary-only row masking, applied to (TV, 1) vectors only.
            srows = jax.lax.broadcasted_iota(jnp.int32, (TV, 1), 0) + vi * TV
            valid = srows < V
            r = jnp.where(valid, r, 0.0)                 # kill OOB-row garbage
            s_dot = jnp.where(valid, s, 0.0)
            s_lse = jnp.where(valid, s, _NEG_LARGE)
        else:
            s_dot = s
            s_lse = s

        part_dot = jnp.sum(r * s_dot, keepdims=True)     # (1, 1)
        part_cnt = jnp.sum(r, keepdims=True)             # (1, 1)
        m_t = jnp.max(s_lse, keepdims=True)              # (1, 1)
        l_t = jnp.sum(jnp.exp(s_lse - m_t), keepdims=True)

        lane = jax.lax.broadcasted_iota(jnp.int32, (1, 128), 1)
        row = jnp.where(lane == 0, part_dot, 0.0)
        row = jnp.where(lane == 1, part_cnt, row)
        row = jnp.where(lane == 2, m_t, row)
        row = jnp.where(lane == 3, l_t, row)
        o_ref[...] = row


def _pick_tv(V, preferred, align):
    """V-tile size: full dim if it fits, else an aligned tile giving an EVEN
    number of balanced V tiles (keeps both v7x TensorCores busy on the
    parallel vi axis; harmless on single-TC v5e/v6e)."""
    if V <= preferred:
        return V
    num = pl.cdiv(V, preferred)
    if num % 2 == 1:
        num += 1
    tv = -(-V // num)                  # ceil(V / num)
    tv = -(-tv // align) * align       # round up to sublane alignment
    return max(tv, align)


def unigram_forward(s, x, *, tv=512, tn=2048):
    """s: (V, 1) logits; x: (V, N) counts (any dtype). Returns (1, 1) f32.

    x is streamed in its native dtype. Default f32 tiles are 512*2048 = 4 MiB
    per buffer (8 MiB double-buffered) -- amortizes per-step overhead while
    staying far under the scoped VMEM limit on v5e/v6e/v7x.
    """
    V, one = s.shape
    assert one == 1
    Vx, N = x.shape
    assert Vx == V

    itemsize = jnp.dtype(x.dtype).itemsize
    sub_align = max(8, 32 // max(itemsize, 1))   # 8 (4B) / 16 (2B) / 32 (1B)
    TV = _pick_tv(V, tv, sub_align)
    TN = N if N <= tn else tn                    # tn is a multiple of 128
    num_v = pl.cdiv(V, TV)
    num_n = pl.cdiv(N, TN)

    kernel = functools.partial(_unigram_kernel, V=V, N=N, TV=TV, TN=TN)

    partials = pl.pallas_call(
        kernel,
        out_shape=jax.ShapeDtypeStruct((num_v, 1, 128), jnp.float32),
        grid_spec=pltpu.PrefetchScalarGridSpec(
            num_scalar_prefetch=0,
            grid=(num_v, num_n),
            in_specs=[
                pl.BlockSpec((TV, 1), lambda vi, ni: (vi, 0)),    # s (logits)
                pl.BlockSpec((TV, TN), lambda vi, ni: (vi, ni)),  # x, native dtype/layout
            ],
            out_specs=pl.BlockSpec((None, 1, 128), lambda vi, ni: (vi, 0, 0)),
            scratch_shapes=[pltpu.VMEM((TV, 1), jnp.float32)],
        ),
        compiler_params=pltpu.CompilerParams(
            # V-tile axis shardable across TensorCores (v7x); N-tile axis is
            # the in-core reduction.
            dimension_semantics=("parallel", "arbitrary"),
            vmem_limit_bytes=48 * 1024 * 1024,
        ),
    )(s.astype(jnp.float32), x)

    # Tiny O(num_v) epilogue: combine per-V-tile partials (stable logsumexp).
    dot_p = partials[:, 0, 0]
    cnt_p = partials[:, 0, 1]
    m_p = partials[:, 0, 2]
    l_p = partials[:, 0, 3]
    m_g = jnp.max(m_p)
    lse = m_g + jnp.log(jnp.sum(l_p * jnp.exp(m_p - m_g)))   # logsumexp(s)
    total = jnp.sum(dot_p) - jnp.sum(cnt_p) * lse
    return total.reshape(1, 1)


def unigram_reference(s, x):
    """Pure-JAX reference matching the PyTorch forward."""
    logp = jax.nn.log_softmax(s.astype(jnp.float32), axis=0)   # (V, 1)
    return jnp.sum(x, axis=1, keepdims=True).T @ logp          # (1, 1)


if __name__ == "__main__":
    key = jax.random.PRNGKey(0)

    # Case 1: module-faithful toy shapes. s = ones((V,1)) like nn.Parameter init.
    V, N = 32, 8
    s1 = jnp.ones((V, 1), dtype=jnp.float32)
    x1 = jax.random.randint(key, (V, N), minval=0, maxval=10).astype(jnp.float32)
    out1 = jax.block_until_ready(unigram_forward(s1, x1))
    ref1 = unigram_reference(s1, x1)
    assert out1.shape == (1, 1)
    assert jnp.allclose(out1, ref1, rtol=2e-5, atol=1e-4), (out1, ref1)

    # Case 2: bf16-streamed x (narrow-dtype HBM read), non-divisible V,
    # multi-V-tile parallel grid with a single full-width N tile.
    V2, N2 = 1111, 1500
    k1, k2 = jax.random.split(key)
    s2 = jax.random.normal(k1, (V2, 1), dtype=jnp.float32)
    x2 = jax.random.randint(k2, (V2, N2), minval=0, maxval=10).astype(jnp.bfloat16)
    ref2 = unigram_reference(s2, x2.astype(jnp.float32))

    out2 = jax.block_until_ready(unigram_forward(s2, x2))
    assert out2.shape == (1, 1)
    assert jnp.allclose(out2, ref2, rtol=2e-5, atol=1e-2), (out2, ref2)

    # Case 3: same data, forced small tiles -> exercises ragged tails on BOTH
    # axes (boundary-only lane/row masking) and the multi-N-tile reduction.
    out3 = jax.block_until_ready(unigram_forward(s2, x2, tv=256, tn=512))
    assert out3.shape == (1, 1)
    assert jnp.allclose(out3, ref2, rtol=2e-5, atol=1e-2), (out3, ref2)

    print("KERNEL_OK")
</pallas_src>

<mosaic_0001>
module attributes {stable_mosaic.version = 11 : i64} {
  func.func @_unigram_kernel(%arg0: i32, %arg1: i32, %arg2: memref<32x1xf32, #tpu.memory_space<vmem>>, %arg3: memref<32x8xf32, #tpu.memory_space<vmem>>, %arg4: memref<1x1x128xf32, #tpu.memory_space<vmem>>, %arg5: memref<32x1xf32, #tpu.memory_space<vmem>>) attributes {dimension_semantics = [#tpu.dimension_semantics<parallel>, #tpu.dimension_semantics<arbitrary>], iteration_bounds = array<i64: 1, 1>, scalar_prefetch = 0 : i64, scratch_operands = 1 : i64, tpu.core_type = #tpu.core_type<tc>, window_params = [{transform_indices = @transform_0, window_bounds = array<i64: 32, 1>}, {transform_indices = @transform_1, window_bounds = array<i64: 32, 8>}, {transform_indices = @transform_2, window_bounds = array<i64: 1, 1, 128>}]} {
    %c0 = arith.constant 0 : index
    %c0_0 = arith.constant 0 : index
    %0 = vector.load %arg3[%c0, %c0_0] : memref<32x8xf32, #tpu.memory_space<vmem>>, vector<32x8xf32>
    %c0_i32 = arith.constant 0 : i32
    %1 = arith.cmpi eq, %arg1, %c0_i32 : i32
    %2 = arith.extui %1 : i1 to i32
    %c0_i32_1 = arith.constant 0 : i32
    %3 = arith.cmpi ne, %2, %c0_i32_1 : i32
    scf.if %3 {
      %cst_8 = arith.constant 0.000000e+00 : f32
      %12 = vector.broadcast %cst_8 : f32 to vector<32x1xf32>
      %c0_9 = arith.constant 0 : index
      %c0_10 = arith.constant 0 : index
      %13 = vector.load %arg5[%c0_9, %c0_10] : memref<32x1xf32, #tpu.memory_space<vmem>>, vector<32x1xf32>
      tpu.vector_store %arg5[%c0_9, %c0_10], %12 {strides = array<i32>} : memref<32x1xf32, #tpu.memory_space<vmem>>, vector<32x1xf32>,
    } else {
    }
    %c0_2 = arith.constant 0 : index
    %c0_3 = arith.constant 0 : index
    %4 = vector.load %arg5[%c0_2, %c0_3] : memref<32x1xf32, #tpu.memory_space<vmem>>, vector<32x1xf32>
    %cst = arith.constant dense<0.000000e+00> : vector<32xf32>
    %5 = vector.multi_reduction <add>, %0, %cst [1] : vector<32x8xf32> to vector<32xf32>
    %6 = vector.shape_cast %5 : vector<32xf32> to vector<32x1xf32>
    %7 = arith.addf %4, %6 : vector<32x1xf32>
    %c0_4 = arith.constant 0 : index
    %c0_5 = arith.constant 0 : index
    %8 = vector.load %arg5[%c0_4, %c0_5] : memref<32x1xf32, #tpu.memory_space<vmem>>, vector<32x1xf32>
    tpu.vector_store %arg5[%c0_4, %c0_5], %7 {strides = array<i32>} : memref<32x1xf32, #tpu.memory_space<vmem>>, vector<32x1xf32>,
    %c0_i32_6 = arith.constant 0 : i32
    %9 = arith.cmpi eq, %arg1, %c0_i32_6 : i32
    %10 = arith.extui %9 : i1 to i32
    %c0_i32_7 = arith.constant 0 : i32
    %11 = arith.cmpi ne, %10, %c0_i32_7 : i32
    scf.if %11 {
      %c0_8 = arith.constant 0 : index
      %c0_9 = arith.constant 0 : index
      %12 = vector.load %arg2[%c0_8, %c0_9] : memref<32x1xf32, #tpu.memory_space<vmem>>, vector<32x1xf32>
      %c0_10 = arith.constant 0 : index
      %c0_11 = arith.constant 0 : index
      %13 = vector.load %arg5[%c0_10, %c0_11] : memref<32x1xf32, #tpu.memory_space<vmem>>, vector<32x1xf32>
      %14 = arith.mulf %13, %12 : vector<32x1xf32>
      %15 = vector.shape_cast %14 : vector<32x1xf32> to vector<1x32x1xf32>
      %cst_12 = arith.constant dense<0.000000e+00> : vector<1xf32>
      %16 = vector.multi_reduction <add>, %15, %cst_12 [1, 2] : vector<1x32x1xf32> to vector<1xf32>
      %17 = vector.shape_cast %16 : vector<1xf32> to vector<1x1x1xf32>
      %18 = vector.extract %17[0, 0, 0] : f32 from vector<1x1x1xf32>
      %19 = vector.broadcast %18 : f32 to vector<1x1xf32>
      %20 = vector.shape_cast %13 : vector<32x1xf32> to vector<1x32x1xf32>
      %cst_13 = arith.constant dense<0.000000e+00> : vector<1xf32>
      %21 = vector.multi_reduction <add>, %20, %cst_13 [1, 2] : vector<1x32x1xf32> to vector<1xf32>
      %22 = vector.shape_cast %21 : vector<1xf32> to vector<1x1x1xf32>
      %23 = vector.extract %22[0, 0, 0] : f32 from vector<1x1x1xf32>
      %24 = vector.broadcast %23 : f32 to vector<1x1xf32>
      %25 = vector.shape_cast %12 : vector<32x1xf32> to vector<1x32x1xf32>
      %cst_14 = arith.constant dense<0xFF800000> : vector<1xf32>
      %26 = vector.multi_reduction <maximumf>, %25, %cst_14 [1, 2] : vector<1x32x1xf32> to vector<1xf32>
      %27 = vector.shape_cast %26 : vector<1xf32> to vector<1x1x1xf32>
      %28 = vector.extract %27[0, 0, 0] : f32 from vector<1x1x1xf32>
      %29 = vector.broadcast %28 : f32 to vector<1x1xf32>
      %30 = vector.broadcast %29 : vector<1x1xf32> to vector<32x1xf32>
      %31 = arith.subf %12, %30 : vector<32x1xf32>
      %32 = math.exp %31 : vector<32x1xf32>
      %33 = vector.shape_cast %32 : vector<32x1xf32> to vector<1x32x1xf32>
      %cst_15 = arith.constant dense<0.000000e+00> : vector<1xf32>
      %34 = vector.multi_reduction <add>, %33, %cst_15 [1, 2] : vector<1x32x1xf32> to vector<1xf32>
      %35 = vector.shape_cast %34 : vector<1xf32> to vector<1x1x1xf32>
      %36 = vector.extract %35[0, 0, 0] : f32 from vector<1x1x1xf32>
      %37 = vector.broadcast %36 : f32 to vector<1x1xf32>
      %38 = tpu.iota {dimensions = array<i32: 1>} : vector<1x128xi32>
      %c0_i32_16 = arith.constant 0 : i32
      %39 = vector.broadcast %c0_i32_16 : i32 to vector<1x128xi32>
      %40 = arith.cmpi eq, %38, %39 : vector<1x128xi32>
      %cst_17 = arith.constant 0.000000e+00 : f32
      %41 = vector.shape_cast %19 : vector<1x1xf32> to vector<1x1xf32>
      %42 = vector.broadcast %41 : vector<1x1xf32> to vector<1x128xf32>
      %43 = vector.broadcast %cst_17 : f32 to vector<1x128xf32>
      %44 = arith.select %40, %42, %43 : vector<1x128xi1>, vector<1x128xf32>
      %c1_i32 = arith.constant 1 : i32
      %45 = vector.broadcast %c1_i32 : i32 to vector<1x128xi32>
      %46 = arith.cmpi eq, %38, %45 : vector<1x128xi32>
      %47 = vector.shape_cast %24 : vector<1x1xf32> to vector<1x1xf32>
      %48 = vector.broadcast %47 : vector<1x1xf32> to vector<1x128xf32>
      %49 = arith.select %46, %48, %44 : vector<1x128xi1>, vector<1x128xf32>
      %c2_i32 = arith.constant 2 : i32
      %50 = vector.broadcast %c2_i32 : i32 to vector<1x128xi32>
      %51 = arith.cmpi eq, %38, %50 : vector<1x128xi32>
      %52 = vector.shape_cast %29 : vector<1x1xf32> to vector<1x1xf32>
      %53 = vector.broadcast %52 : vector<1x1xf32> to vector<1x128xf32>
      %54 = arith.select %51, %53, %49 : vector<1x128xi1>, vector<1x128xf32>
      %c3_i32 = arith.constant 3 : i32
      %55 = vector.broadcast %c3_i32 : i32 to vector<1x128xi32>
      %56 = arith.cmpi eq, %38, %55 : vector<1x128xi32>
      %57 = vector.shape_cast %37 : vector<1x1xf32> to vector<1x1xf32>
      %58 = vector.broadcast %57 : vector<1x1xf32> to vector<1x128xf32>
      %59 = arith.select %56, %58, %54 : vector<1x128xi1>, vector<1x128xf32>
      %c0_18 = arith.constant 0 : index
      %c0_19 = arith.constant 0 : index
      %c0_20 = arith.constant 0 : index
      %60 = vector.load %arg4[%c0_18, %c0_19, %c0_20] : memref<1x1x128xf32, #tpu.memory_space<vmem>>, vector<1x1x128xf32>
      %61 = vector.shape_cast %60 : vector<1x1x128xf32> to vector<1x128xf32>
      %62 = vector.shape_cast %59 : vector<1x128xf32> to vector<1x1x128xf32>
      tpu.vector_store %arg4[%c0_18, %c0_19, %c0_20], %62 {strides = array<i32>} : memref<1x1x128xf32, #tpu.memory_space<vmem>>, vector<1x1x128xf32>,
    } else {
    }
    return
  }
  func.func @transform_0(%arg0: i32, %arg1: i32) -> (i32, i32) {
    %c0_i32 = arith.constant 0 : i32
    %c0_i32_0 = arith.constant 0 : i32
    return %arg0, %c0_i32 : i32, i32
  }
  func.func @transform_1(%arg0: i32, %arg1: i32) -> (i32, i32) {
    %c0_i32 = arith.constant 0 : i32
    return %arg0, %arg1 : i32, i32
  }
  func.func @transform_2(%arg0: i32, %arg1: i32) -> (i32, i32, i32) {
    %c0_i32 = arith.constant 0 : i32
    %c0_i32_0 = arith.constant 0 : i32
    %c0_i32_1 = arith.constant 0 : i32
    return %arg0, %c0_i32, %c0_i32_0 : i32, i32, i32
  }
}

</mosaic_0001>

<bundles_post_ra>
// kernel: tpu_custom_call.1
= control target key start
LH: loop header
LB: loop body
LE: loop exit
PB: predicated region body
PF: predicated region fallthrough
CT: control target
= control target key end

     0   :  { %vm29_vm0 = vcmask 64512   ;;  %vm20_vm1 = vcmask 7168   ;;  %v213_v6 = vmov 0.0   ;;  %s314_s0 = inlined_call_operand.vmem [shape: f32[32,1], index: 0, kind: input, shape index: {}]   ;;  %s315_s1 = inlined_call_operand.vmem [shape: f32[32,8], index: 1, kind: input, shape index: {}]   ;;  %s316_s2 = inlined_call_operand.hbm [shape: f32[1,1,128], index: 2, kind: output, shape index: {}]  }
   0x1   :  { %v12_v0 = vld [vmem:[%s315_s1] sm:$0xff]  ;;  %v14_v1 = vld [vmem:[%s315_s1 + $0x10] sm:$0xff]  ;;  %v13_v2 = vld [vmem:[%s315_s1 + $0x8] sm:$0xff]  ;;  %21 = vst.msk [vmem:[#allocation2] sm:$0xff] %vm20_vm1, %v213_v6 }
   0x2   :  { %v30_v3 = vsel %vm29_vm0, %v12_v0, 0.0  ;;  %v36_v4 = vsel %vm29_vm0, %v14_v1, 0.0  ;;  %v15_v5 = vld [vmem:[%s315_s1 + $0x18] sm:$0xff]  ;;  %22 = vst.msk [vmem:[#allocation2 + $0x8] sm:$0xff] %vm20_vm1, %v213_v6  ;;  %23 = vst.msk [vmem:[#allocation2 + $0x10] sm:$0xff] %vm20_vm1, %v213_v6 }
   0x3   :  { %24 = vst.msk [vmem:[#allocation2 + $0x18] sm:$0xff] %vm20_vm1, %v213_v6 }
   0x4   :  { %7 = vsyncpa [#allocation4], 0  ;;  %31 = vadd.xlane.f32.xlu0 %v30_v3  ;;  %37 = vadd.xlane.f32.xlu1 %v36_v4  ;;  %v33_v7 = vsel %vm29_vm0, %v13_v2, 0.0  ;;  %v39_v8 = vsel %vm29_vm0, %v15_v5, 0.0  ;;  %v257_v22 = vld [vmem:[%s314_s0] sm:$0xff]  ;;  %v262_v23 = vld [vmem:[%s314_s0 + $0x8] sm:$0xff] }
   0x5   :  { %v267_v25 = vld [vmem:[%s314_s0 + $0x10] sm:$0xff]  ;;  %v272_v26 = vld [vmem:[%s314_s0 + $0x18] sm:$0xff]  ;;  %v98_v31 = vsel %vm20_vm1, %v257_v22, -inf  ;;  %v99_v37 = vsel %vm20_vm1, %v262_v23, -inf  ;;  %s214_s26 = smov [#allocation3]  }
   0x6   :  { %v100_v38 = vsel %vm20_vm1, %v267_v25, -inf  ;;  %v101_v39 = vsel %vm20_vm1, %v272_v26, -inf  ;;  %v102_v50 = vmax.f32 %v98_v31, %v99_v37  ;;  %s163_s27 = sshll.u32 %s214_s26, 4  ;;  %s164_s27 = int_to_ptr.vmem [resolvable:$true] %s163_s27 }
   0x7   :  { %v103_v51 = vmax.f32 %v100_v38, %v101_v39  ;;  %s189_s29 = scalar_lea.vmem %s164_s27, 16  ;;  %s193_s30 = scalar_lea.vmem %s164_s27, 32 }
   0x8   :  { %34 = vadd.xlane.f32.xlu0 %v33_v7  ;;  %40 = vadd.xlane.f32.xlu1 %v39_v8  ;;  %v25_v9 = vld [vmem:[#allocation2] sm:$0xff]  ;;  %p190_p0 = scmp.ne.s32.totalorder %s164_s27, %s189_s29  ;;  %p194_p1 = scmp.lt.s32.totalorder %s164_s27, %s164_s27 }
   0x9   :  { %v27_v10 = vld [vmem:[#allocation2 + $0x10] sm:$0xff]  ;;  %v26_v15 = vld [vmem:[#allocation2 + $0x8] sm:$0xff]  ;;  %v104_v53 = vmax.f32 %v102_v50, %v103_v51  ;;  %p195_p2 = scmp.lt.s32.totalorder %s193_s30, %s189_s29 }
   0xa   :  { %v28_v16 = vld [vmem:[#allocation2 + $0x18] sm:$0xff] }
   0xb   :  { %p196_p3 = por %p195_p2, %p194_p1 }
   0xd   :  { %p197_p4 = pnand %p196_p3, %p190_p0 }
  0x91   :  { %v32_v11 = vpop.xlane.xlu0 %31  ;;  %v38_v12 = vpop.xlane.xlu1 %37 }
  0x92   :  { %v42_v13 = vadd.f32 %v32_v11, %v25_v9  ;;  %v44_v14 = vadd.f32 %v38_v12, %v27_v10  ;;  %v143_v11 = vlaneseq }
  0x94   :  { %47 = vst.msk [vmem:[#allocation2] sm:$0xff] %vm20_vm1, %v42_v13  ;;  %49 = vst.msk [vmem:[#allocation2 + $0x10] sm:$0xff] %vm20_vm1, %v44_v14  ;;  %v144_v12 = vand.u32 127, %v143_v11 }
  0x95   :  { %v35_v17 = vpop.xlane.xlu0 %34  ;;  %v41_v18 = vpop.xlane.xlu1 %40 }
  0x96   :  { %v43_v19 = vadd.f32 %v35_v17, %v26_v15  ;;  %v45_v20 = vadd.f32 %v41_v18, %v28_v16  ;;  %vm145_vm2 = vcmp.eq.s32.totalorder %v144_v12, 0  ;;  %vm148_vm3 = vcmp.eq.s32.totalorder %v144_v12, 1 }
  0x97   :  { %vm151_vm4 = vcmp.eq.s32.totalorder %v144_v12, 2  ;;  %vm153_vm5 = vcmp.eq.s32.totalorder %v144_v12, 3 }
  0x98   :  { %48 = vst.msk [vmem:[#allocation2 + $0x8] sm:$0xff] %vm20_vm1, %v43_v19  ;;  %50 = vst.msk [vmem:[#allocation2 + $0x18] sm:$0xff] %vm20_vm1, %v45_v20 }
  0x9b   :  { %v58_v21 = vld [vmem:[#allocation2] sm:$0xff]  ;;  %v60_v24 = vld [vmem:[#allocation2 + $0x10] sm:$0xff] }
  0x9c   :  { %v62_v27 = vmul.f32 %v58_v21, %v257_v22  ;;  %v82_v30 = vsel %vm20_vm1, %v58_v21, 0.0  ;;  %v64_v34 = vmul.f32 %v60_v24, %v267_v25  ;;  %v85_v40 = vsel %vm20_vm1, %v60_v24, 0.0 }
  0x9e   :  { %v66_v42 = vsel %vm20_vm1, %v62_v27, 0.0  ;;  %v69_v46 = vsel %vm20_vm1, %v64_v34, 0.0 }
  0x9f   :  { %v59_v28 = vld [vmem:[#allocation2 + $0x8] sm:$0xff]  ;;  %v61_v29 = vld [vmem:[#allocation2 + $0x18] sm:$0xff] }
  0xa0   :  { %v83_v32 = vsel %vm20_vm1, %v59_v28, 0.0  ;;  %v63_v33 = vmul.f32 %v59_v28, %v262_v23  ;;  %v65_v35 = vmul.f32 %v61_v29, %v272_v26  ;;  %v87_v41 = vsel %vm20_vm1, %v61_v29, 0.0 }
  0xa1   :  { %v84_v36 = vadd.f32 %v83_v32, %v82_v30 }
  0xa2   :  { %v67_v43 = vsel %vm20_vm1, %v63_v33, 0.0  ;;  %v71_v47 = vsel %vm20_vm1, %v65_v35, 0.0 }
  0xa3   :  { %v86_v44 = vadd.f32 %v85_v40, %v84_v36  ;;  %v68_v45 = vadd.f32 %v67_v43, %v66_v42 }
  0xa5   :  { %v88_v48 = vadd.f32 %v87_v41, %v86_v44  ;;  %v70_v49 = vadd.f32 %v69_v46, %v68_v45 }
  0xa7   :  { %89 = vadd.xlane.f32.xlu1 %v88_v48  ;;  %v72_v52 = vadd.f32 %v71_v47, %v70_v49 }
  0xa9   :  { %73 = vadd.xlane.f32.xlu0 %v72_v52 }
  0xad   :  { %105 = vmax.xlane.f32.xlu0 %v104_v53 }
 0x134   :  { %v90_v54 = vpop.xlane.xlu1 %89 }
 0x135   :  { %v91_v55 = vrot.slane %v90_v54, 4 }
 0x136   :  { %v74_v56 = vpop.xlane.xlu0 %73 }
 0x137   :  { %v92_v57 = vadd.f32 %v91_v55, %v90_v54  ;;  %v75_v58 = vrot.slane %v74_v56, 4 }
 0x139   :  { %v93_v59 = vrot.slane %v92_v57, 2  ;;  %v76_v60 = vadd.f32 %v75_v58, %v74_v56 }
 0x13a   :  { %v106_v61 = vpop.xlane.xlu0 %105 }
 0x13b   :  { %v77_v62 = vrot.slane %v76_v60, 2  ;;  %v107_v63 = vrot.slane %v106_v61, 4  ;;  %v94_v0 = vadd.f32 %v93_v59, %v92_v57 }
 0x13d   :  { %v108_v1 = vmax.f32 %v106_v61, %v107_v63  ;;  %v78_v2 = vadd.f32 %v77_v62, %v76_v60  ;;  %v95_v3 = vrot.slane %v94_v0, 1 }
 0x13f   :  { %v109_v4 = vrot.slane %v108_v1, 2  ;;  %v79_v5 = vrot.slane %v78_v2, 1  ;;  %v96_v8 = vadd.f32 %v95_v3, %v94_v0 }
 0x141   :  { %v110_v6 = vmax.f32 %v108_v1, %v109_v4  ;;  %v80_v7 = vadd.f32 %v79_v5, %v78_v2 }
 0x143   :  { %171 = vpush %v80_v7  ;;  %v111_v9 = vrot.slane %v110_v6, 1 }
 0x144   :  { %173 = vpush %v96_v8 }
 0x145   :  { %v112_v10 = vmax.f32 %v110_v6, %v111_v9 }
 0x147   :  { %175 = vpush %v112_v10 }
 0x174   :  { %s172_s0 = spop %171 }
 0x175   :  { %v146_v13 = vstv %s172_s0  ;;  %s174_s24 = spop %173 }
 0x176   :  { %v147_v14 = vsel %vm145_vm2, %v146_v13, 0.0  ;;  %v149_v15 = vstv %s174_s24 }
 0x177   :  { %v150_v16 = vsel %vm148_vm3, %v149_v15, %v147_v14 }
 0x178   :  { %s176_s25 = spop %175 }
 0x179   :  { %v114_v17 = vstv %s176_s25 }
 0x17a   :  { %v115_v18 = vsub.f32 %v257_v22, %v114_v17  ;;  %v116_v19 = vsub.f32 %v262_v23, %v114_v17  ;;  %v117_v20 = vsub.f32 %v267_v25, %v114_v17  ;;  %v118_v21 = vsub.f32 %v272_v26, %v114_v17 }
 0x17b   :  { %v152_v24 = vsel %vm151_vm4, %v114_v17, %v150_v16 }
 0x17c   :  { %v119_v27 = vmul.f32 1.442695, %v115_v18  ;;  %v121_v28 = vmul.f32 1.442695, %v116_v19  ;;  %v123_v29 = vmul.f32 1.442695, %v117_v20 }
 0x17d   :  { %v125_v30 = vmul.f32 1.442695, %v118_v21 }
 0x17e   :  { %181 = vpow2.f32 %v119_v27 }
 0x17f   :  { %183 = vpow2.f32 %v121_v28 }
 0x180   :  { %185 = vpow2.f32 %v123_v29 }
 0x181   :  { %187 = vpow2.f32 %v125_v30 }
 0x188   :  { %v182_v31 = vpop.eup %181 }
 0x189   :  { %v184_v32 = vpop.eup %183  ;;  %v127_v33 = vsel %vm20_vm1, %v182_v31, 0.0 }
 0x18a   :  { %v186_v22 = vpop.eup %185  ;;  %v128_v23 = vsel %vm20_vm1, %v184_v32, 0.0 }
 0x18b   :  { %v188_v34 = vpop.eup %187  ;;  %v129_v25 = vadd.f32 %v128_v23, %v127_v33  ;;  %v130_v26 = vsel %vm20_vm1, %v186_v22, 0.0 }
 0x18c   :  { %v132_v36 = vsel %vm20_vm1, %v188_v34, 0.0 }
 0x18d   :  { %v131_v35 = vadd.f32 %v130_v26, %v129_v25 }
 0x18f   :  { %v133_v37 = vadd.f32 %v132_v36, %v131_v35 }
 0x191   :  { %134 = vadd.xlane.f32.xlu1 %v133_v37 }
 0x21e   :  { %v135_v38 = vpop.xlane.xlu1 %134 }
 0x21f   :  { %v136_v39 = vrot.slane %v135_v38, 4 }
 0x221   :  { %v137_v40 = vadd.f32 %v136_v39, %v135_v38 }
 0x223   :  { %v138_v41 = vrot.slane %v137_v40, 2 }
 0x225   :  { %v139_v42 = vadd.f32 %v138_v41, %v137_v40 }
 0x227   :  { %v140_v43 = vrot.slane %v139_v42, 1 }
 0x229   :  { %v141_v44 = vadd.f32 %v140_v43, %v139_v42 }
 0x22b   :  { %177 = vpush %v141_v44 }
 0x25c   :  { %s178_s28 = spop %177 }
 0x25d   :  { %v154_v45 = vstv %s178_s28 }
 0x25e   :  { %v155_v46 = vsel %vm153_vm5, %v154_v45, %v152_v24 }
 0x25f   :  { %156 = vst [vmem:[#allocation3] sm:$0x1] %v155_v46 }
 0x260   :  { %200 = shalt.err (!%p197_p4)
}
 0x261   :  { %s201_s5 = scalar_lea.hbm %s316_s2, 16 }
 0x262   :  { %p202_p5 = scmp.ne.s32.totalorder %s316_s2, %s201_s5  ;;  %p205_p6 = scmp.lt.u32.totalorder %s201_s5, %s316_s2 }
 0x264   :  { %p207_p7 = pnand %p205_p6, %p202_p5 }
 0x266   :  { %210 = shalt.err (!%p207_p7)
}
 0x267   :  { %166 = dma.vmem_to_hbm [thread:$0]  %s164_s27, 16, %s316_s2, [#allocation4]  }
 0x268   :  { %211 = dma.done.wait [#allocation4], 16  }
 0x269   :  { %212 = vsyncadd [#allocation4], 4294967280 }
 0x26a   :  { %170 = vsyncpa [#allocation4], 1 }

</bundles_post_ra>
